<compile_context>
chip_gen: v6e
topology: v6e:2x2x1
jax: 0.10.0
libtpu: 0.0.40
codegen_flags: <defaults>
</compile_context>

<pallas_src>
import functools
import math

import jax
import jax.numpy as jnp
from jax.experimental import pallas as pl
from jax.experimental.pallas import tpu as pltpu


def _round_up(x, m):
    return ((x + m - 1) // m) * m


def _default_mxu_dtype():
    """bf16 MXU inputs on every TPU generation (f32 accumulate); f32 elsewhere."""
    try:
        plat = jax.devices()[0].platform
    except Exception:
        return jnp.float32
    return jnp.bfloat16 if plat == "tpu" else jnp.float32


def _choose_tb(batch, mxu_dtype):
    """Pick the batch tile: sublane-aligned, big enough to amortize per-step
    pipeline overhead, >=2 tiles when cheap (v7x megacore), minimal dead rows."""
    sub = 16 if mxu_dtype == jnp.bfloat16 else 8
    if batch <= 512:
        tb = _round_up(batch, sub)
        half = _round_up((batch + 1) // 2, sub)
        # Split into two equal tiles (both v7x cores) when it adds no padding.
        if batch > 2 * sub and 2 * half == tb:
            return half
        return tb
    best_tb, best_key = None, None
    for tb in (2048, 1024, 512, 256, 128):
        pb = _round_up(batch, tb)
        ntiles = pb // tb
        waste = pb - batch
        key = (0 if ntiles >= 2 else 1, waste, -tb)  # >=2 tiles, then min waste, then big tiles
        if best_key is None or key < best_key:
            best_key, best_tb = key, tb
    return best_tb


def _make_mlp_kernel(n_layers, mxu_dtype):
    """Kernel computing the full MLP forward on one (TB, in_dim) batch tile."""

    def kernel(*refs):
        # refs = (x_ref, w0, b0, w1, b1, ..., w_{n-1}, b_{n-1}, o_ref)
        x_ref = refs[0]
        o_ref = refs[-1]
        h = x_ref[...].astype(mxu_dtype)        # cast in-kernel; x DMA stays narrow f32
        for i in range(n_layers):
            w = refs[1 + 2 * i][...]            # mxu_dtype, resident (constant index_map)
            b = refs[2 + 2 * i][...]            # f32, (1, out) broadcasts over rows
            acc = jnp.dot(h, w, preferred_element_type=jnp.float32) + b
            if i != n_layers - 1:
                h = jnp.maximum(acc, 0.0).astype(mxu_dtype)   # ReLU in f32, recast for MXU
            else:
                h = jnp.tanh(acc) * 3.0                       # tanh*3 on the EUP, f32
        o_ref[...] = h.astype(o_ref.dtype)

    return kernel


def prepare_params(params, mxu_dtype):
    """One-time weight cast / bias shaping, hoisted out of the per-call forward."""
    prepped = []
    for w, b in params:
        prepped.append((jnp.asarray(w, mxu_dtype),
                        jnp.asarray(b, jnp.float32).reshape(1, -1)))
    return prepped


def mlp_forward(x, params, *, mxu_dtype=None):
    """Run the Network forward pass as a single batch-gridded Pallas TPU kernel.

    Args:
      x: [batch, neurons_list[0]] float32.
      params: list of (W, b) with W: [in, out] (mxu_dtype), b: [1, out] (float32),
        e.g. from prepare_params().
      mxu_dtype: dtype fed to the MXU (default: bf16 on TPU, f32 otherwise).
    Returns:
      [batch, neurons_list[-1]] float32.
    """
    if mxu_dtype is None:
        mxu_dtype = _default_mxu_dtype()

    n_layers = len(params)
    batch, in_dim = x.shape
    out_dim = params[-1][0].shape[1]

    TB = _choose_tb(batch, mxu_dtype)
    padded_batch = _round_up(batch, TB)
    grid = (pl.cdiv(padded_batch, TB),)

    # Row-pad only (no lane padding): padded rows are garbage after the biases but
    # are sliced off below; they never contaminate real rows.
    x_p = jnp.pad(x, ((0, padded_batch - batch), (0, 0))) if padded_batch != batch else x

    flat_args = [x_p]
    # Last block dim == full array extent, so narrow feature widths are legal.
    in_specs = [pl.BlockSpec((TB, in_dim), lambda i: (i, 0))]
    for w, b in params:
        flat_args.extend([w, b])
        in_specs.append(pl.BlockSpec(w.shape, lambda i: (0, 0)))   # resident weights
        in_specs.append(pl.BlockSpec(b.shape, lambda i: (0, 0)))   # resident bias

    out_spec = pl.BlockSpec((TB, out_dim), lambda i: (i, 0))       # real-width output

    out_padded = pl.pallas_call(
        _make_mlp_kernel(n_layers, mxu_dtype),
        out_shape=jax.ShapeDtypeStruct((padded_batch, out_dim), jnp.float32),
        grid=grid,
        in_specs=in_specs,
        out_specs=out_spec,
        compiler_params=pltpu.CompilerParams(
            dimension_semantics=("parallel",),      # megacore sharding on v7x
            vmem_limit_bytes=32 * 1024 * 1024,      # plenty; working set is ~1 MiB
        ),
    )(*flat_args)

    return out_padded[:batch] if padded_batch != batch else out_padded


def init_params(key, neurons_list):
    """Deterministic init matching PyTorch nn.Linear default (uniform +-1/sqrt(fan_in))."""
    params = []
    for i in range(len(neurons_list) - 1):
        fan_in, fan_out = neurons_list[i], neurons_list[i + 1]
        bound = 1.0 / math.sqrt(fan_in)
        key, kw, kb = jax.random.split(key, 3)
        w = jax.random.uniform(kw, (fan_in, fan_out), jnp.float32, -bound, bound)
        b = jax.random.uniform(kb, (1, fan_out), jnp.float32, -bound, bound)
        params.append((w, b))
    return params


def mlp_reference(x, params):
    """Pure-JAX f32 reference of the PyTorch forward."""
    h = x
    n = len(params)
    for i, (w, b) in enumerate(params):
        h = h @ w.astype(jnp.float32) + b
        if i != n - 1:
            h = jnp.maximum(h, 0.0)
        else:
            h = jnp.tanh(h) * 3.0
    return h


if __name__ == "__main__":
    # Network(neurons_list=[16, 32, 32, 8]): 3 Linear layers.
    neurons_list = [16, 32, 32, 8]
    batch = 2

    key = jax.random.PRNGKey(0)
    key, kx = jax.random.split(key)
    x = jax.random.normal(kx, (batch, neurons_list[0]), jnp.float32)
    params_f32 = init_params(key, neurons_list)

    mxu_dtype = _default_mxu_dtype()
    params = prepare_params(params_f32, mxu_dtype)        # hoisted one-time cast

    fwd = jax.jit(functools.partial(mlp_forward, mxu_dtype=mxu_dtype))
    out = fwd(x, params)
    out = jax.block_until_ready(out)

    ref = mlp_reference(x, params_f32)
    assert out.shape == (batch, neurons_list[-1])
    if mxu_dtype == jnp.bfloat16:
        tol = dict(atol=5e-2, rtol=5e-2)   # bf16 MXU inputs, f32 accumulate
    else:
        tol = dict(atol=1e-5, rtol=1e-5)
    assert jnp.allclose(out, ref, **tol), "mismatch vs reference"

    print("KERNEL_OK")
</pallas_src>

<mosaic_0001>
module attributes {stable_mosaic.version = 11 : i64} {
  func.func @kernel(%arg0: i32, %arg1: memref<8x16xf32, #tpu.memory_space<vmem>>, %arg2: memref<16x32xf32, #tpu.memory_space<vmem>>, %arg3: memref<1x32xf32, #tpu.memory_space<vmem>>, %arg4: memref<32x32xf32, #tpu.memory_space<vmem>>, %arg5: memref<1x32xf32, #tpu.memory_space<vmem>>, %arg6: memref<32x8xf32, #tpu.memory_space<vmem>>, %arg7: memref<1x8xf32, #tpu.memory_space<vmem>>, %arg8: memref<8x8xf32, #tpu.memory_space<vmem>>) attributes {dimension_semantics = [#tpu.dimension_semantics<parallel>], iteration_bounds = array<i64: 1>, scalar_prefetch = 0 : i64, scratch_operands = 0 : i64, tpu.core_type = #tpu.core_type<tc>, window_params = [{transform_indices = @transform_0, window_bounds = array<i64: 8, 16>}, {pipeline_mode = #tpu.pipeline_mode<synchronous>, transform_indices = @transform_1, window_bounds = array<i64: 16, 32>}, {pipeline_mode = #tpu.pipeline_mode<synchronous>, transform_indices = @transform_2, window_bounds = array<i64: 1, 32>}, {pipeline_mode = #tpu.pipeline_mode<synchronous>, transform_indices = @transform_3, window_bounds = array<i64: 32, 32>}, {pipeline_mode = #tpu.pipeline_mode<synchronous>, transform_indices = @transform_4, window_bounds = array<i64: 1, 32>}, {pipeline_mode = #tpu.pipeline_mode<synchronous>, transform_indices = @transform_5, window_bounds = array<i64: 32, 8>}, {pipeline_mode = #tpu.pipeline_mode<synchronous>, transform_indices = @transform_6, window_bounds = array<i64: 1, 8>}, {transform_indices = @transform_7, window_bounds = array<i64: 8, 8>}]} {
    %c0 = arith.constant 0 : index
    %c0_0 = arith.constant 0 : index
    %0 = vector.load %arg1[%c0, %c0_0] : memref<8x16xf32, #tpu.memory_space<vmem>>, vector<8x16xf32>
    %c0_1 = arith.constant 0 : index
    %c0_2 = arith.constant 0 : index
    %1 = vector.load %arg2[%c0_1, %c0_2] : memref<16x32xf32, #tpu.memory_space<vmem>>, vector<16x32xf32>
    %c0_3 = arith.constant 0 : index
    %c0_4 = arith.constant 0 : index
    %2 = vector.load %arg3[%c0_3, %c0_4] : memref<1x32xf32, #tpu.memory_space<vmem>>, vector<1x32xf32>
    %cst = arith.constant dense<0.000000e+00> : vector<8x32xf32>
    %3 = tpu.matmul %0, %1, %cst {dimension_numbers = #tpu.dot_dimension_numbers<[1], [0], [0], [1], [0, 0, 1, 1], [], []>} : vector<8x16xf32>, vector<16x32xf32>, vector<8x32xf32> -> vector<8x32xf32>
    %4 = vector.broadcast %2 : vector<1x32xf32> to vector<8x32xf32>
    %5 = arith.addf %3, %4 : vector<8x32xf32>
    %cst_5 = arith.constant 0.000000e+00 : f32
    %6 = vector.broadcast %cst_5 : f32 to vector<8x32xf32>
    %7 = arith.maximumf %5, %6 : vector<8x32xf32>
    %c0_6 = arith.constant 0 : index
    %c0_7 = arith.constant 0 : index
    %8 = vector.load %arg4[%c0_6, %c0_7] : memref<32x32xf32, #tpu.memory_space<vmem>>, vector<32x32xf32>
    %c0_8 = arith.constant 0 : index
    %c0_9 = arith.constant 0 : index
    %9 = vector.load %arg5[%c0_8, %c0_9] : memref<1x32xf32, #tpu.memory_space<vmem>>, vector<1x32xf32>
    %cst_10 = arith.constant dense<0.000000e+00> : vector<8x32xf32>
    %10 = tpu.matmul %7, %8, %cst_10 {dimension_numbers = #tpu.dot_dimension_numbers<[1], [0], [0], [1], [0, 0, 1, 1], [], []>} : vector<8x32xf32>, vector<32x32xf32>, vector<8x32xf32> -> vector<8x32xf32>
    %11 = vector.broadcast %9 : vector<1x32xf32> to vector<8x32xf32>
    %12 = arith.addf %10, %11 : vector<8x32xf32>
    %cst_11 = arith.constant 0.000000e+00 : f32
    %13 = vector.broadcast %cst_11 : f32 to vector<8x32xf32>
    %14 = arith.maximumf %12, %13 : vector<8x32xf32>
    %c0_12 = arith.constant 0 : index
    %c0_13 = arith.constant 0 : index
    %15 = vector.load %arg6[%c0_12, %c0_13] : memref<32x8xf32, #tpu.memory_space<vmem>>, vector<32x8xf32>
    %c0_14 = arith.constant 0 : index
    %c0_15 = arith.constant 0 : index
    %16 = vector.load %arg7[%c0_14, %c0_15] : memref<1x8xf32, #tpu.memory_space<vmem>>, vector<1x8xf32>
    %cst_16 = arith.constant dense<0.000000e+00> : vector<8x8xf32>
    %17 = tpu.matmul %14, %15, %cst_16 {dimension_numbers = #tpu.dot_dimension_numbers<[1], [0], [0], [1], [0, 0, 1, 1], [], []>} : vector<8x32xf32>, vector<32x8xf32>, vector<8x8xf32> -> vector<8x8xf32>
    %18 = vector.broadcast %16 : vector<1x8xf32> to vector<8x8xf32>
    %19 = arith.addf %17, %18 : vector<8x8xf32>
    %20 = math.tanh %19 : vector<8x8xf32>
    %cst_17 = arith.constant 3.000000e+00 : f32
    %21 = vector.broadcast %cst_17 : f32 to vector<8x8xf32>
    %22 = arith.mulf %20, %21 : vector<8x8xf32>
    %c0_18 = arith.constant 0 : index
    %c0_19 = arith.constant 0 : index
    %23 = vector.load %arg8[%c0_18, %c0_19] : memref<8x8xf32, #tpu.memory_space<vmem>>, vector<8x8xf32>
    tpu.vector_store %arg8[%c0_18, %c0_19], %22 {strides = array<i32>} : memref<8x8xf32, #tpu.memory_space<vmem>>, vector<8x8xf32>,
    return
  }
  func.func @transform_0(%arg0: i32) -> (i32, i32) {
    %c0_i32 = arith.constant 0 : i32
    %c0_i32_0 = arith.constant 0 : i32
    return %arg0, %c0_i32 : i32, i32
  }
  func.func @transform_1(%arg0: i32) -> (i32, i32) {
    %c0_i32 = arith.constant 0 : i32
    %c0_i32_0 = arith.constant 0 : i32
    %c0_i32_1 = arith.constant 0 : i32
    return %c0_i32, %c0_i32_0 : i32, i32
  }
  func.func @transform_2(%arg0: i32) -> (i32, i32) {
    %c0_i32 = arith.constant 0 : i32
    %c0_i32_0 = arith.constant 0 : i32
    %c0_i32_1 = arith.constant 0 : i32
    return %c0_i32, %c0_i32_0 : i32, i32
  }
  func.func @transform_3(%arg0: i32) -> (i32, i32) {
    %c0_i32 = arith.constant 0 : i32
    %c0_i32_0 = arith.constant 0 : i32
    %c0_i32_1 = arith.constant 0 : i32
    return %c0_i32, %c0_i32_0 : i32, i32
  }
  func.func @transform_4(%arg0: i32) -> (i32, i32) {
    %c0_i32 = arith.constant 0 : i32
    %c0_i32_0 = arith.constant 0 : i32
    %c0_i32_1 = arith.constant 0 : i32
    return %c0_i32, %c0_i32_0 : i32, i32
  }
  func.func @transform_5(%arg0: i32) -> (i32, i32) {
    %c0_i32 = arith.constant 0 : i32
    %c0_i32_0 = arith.constant 0 : i32
    %c0_i32_1 = arith.constant 0 : i32
    return %c0_i32, %c0_i32_0 : i32, i32
  }
  func.func @transform_6(%arg0: i32) -> (i32, i32) {
    %c0_i32 = arith.constant 0 : i32
    %c0_i32_0 = arith.constant 0 : i32
    %c0_i32_1 = arith.constant 0 : i32
    return %c0_i32, %c0_i32_0 : i32, i32
  }
  func.func @transform_7(%arg0: i32) -> (i32, i32) {
    %c0_i32 = arith.constant 0 : i32
    %c0_i32_0 = arith.constant 0 : i32
    return %arg0, %c0_i32 : i32, i32
  }
}

</mosaic_0001>

<bundles_post_ra>
// kernel: mlp_forward.1
= control target key start
LH: loop header
LB: loop body
LE: loop exit
PB: predicated region body
PF: predicated region fallthrough
CT: control target
= control target key end

     0   :  { %v341_v0 = vmov 0.0   ;;  %vm342_vm0 = vmmov 0   ;;  %vm36_vm1 = vcmask 130048   ;;  %vm122_vm2 = vcmask 261120   ;;  %s430_s1 = inlined_call_operand.vmem [shape: f32[16,32], index: 1, kind: input, shape index: {}]   ;;  %s431_s0 = inlined_call_operand.vmem [shape: f32[8,16], index: 0, kind: input, shape index: {}]   ;;  %s432_s3 = inlined_call_operand.vmem [shape: f32[32,32], index: 3, kind: input, shape index: {}]   ;;  %s433_s5 = inlined_call_operand.vmem [shape: f32[32,8], index: 5, kind: input, shape index: {}]   ;;  %s434_s2 = inlined_call_operand.vmem [shape: f32[1,32], index: 2, kind: input, shape index: {}]   ;;  %s435_s4 = inlined_call_operand.vmem [shape: f32[1,32], index: 4, kind: input, shape index: {}]   ;;  %s436_s6 = inlined_call_operand.vmem [shape: f32[1,8], index: 6, kind: input, shape index: {}]   ;;  %s437_s7 = inlined_call_operand.vmem [shape: f32[8,8], index: 7, kind: output, shape index: {}]  }
   0x1   :  { %308 = vmatprep.subr.mxu0 %v341_v0  ;;  %v28_v1 = vld [vmem:[%s430_s1 + $0x8] sm:$0xff]  ;;  %v27_v2 = vld [vmem:[%s430_s1] sm:$0xff]  ;;  %312 = vmatprep.mubr.msk.f32.mxu0 %vm342_vm0, %v341_v0  ;;  %v114_v4 = vld [vmem:[%s432_s3 + $0x18] sm:$0xff]  ;;  %vm283_vm3 = vcmask 64512  }
   0x2   :  { %309 = vmatpush3.msra.mxu0 %v28_v1  ;;  %v26_v3 = vld [vmem:[%s431_s0] sm:$0xff]  ;;  %315 = vmatprep.subr.mxu1 %v341_v0  ;;  %v113_v5 = vld [vmem:[%s432_s3 + $0x10] sm:$0xff]  ;;  %v112_v6 = vld [vmem:[%s432_s3 + $0x8] sm:$0xff] }
   0x3   :  { %310 = vmatprep.subr.mxu0 %v341_v0  ;;  %316 = vmatpush3.msra.mxu1 %v114_v4  ;;  %v111_v7 = vld [vmem:[%s432_s3] sm:$0xff]  ;;  %v200_v8 = vld [vmem:[%s433_s5 + $0x18] sm:$0xff]  ;;  %v199_v14 = vld [vmem:[%s433_s5 + $0x10] sm:$0xff] }
   0x4   :  { %311 = vmatpush3.msra.mxu0 %v27_v2  ;;  %317 = vmatprep.subr.mxu1 %v341_v0  ;;  %v289_v9 = vld [vmem:[%s434_s2] ss:$0 sm:$0xff]  ;;  %v198_v15 = vld [vmem:[%s433_s5 + $0x8] sm:$0xff] }
   0x5   :  { %313 = vmatmul.mubr.msk.f32.vlgmr.msra.gmra.mxu0 %vm36_vm1, %v26_v3  ;;  %323 = vmatprep.mubr.msk.f32.mxu1 %vm342_vm0, %v341_v0  ;;  %v197_v16 = vld [vmem:[%s433_s5] sm:$0xff] }
   0x6   :  { %326 = vmatprep.subr.mxu0 %v341_v0  ;;  %334 = vmatprep.mubr.msk.f32.mxu0 %vm342_vm0, %v341_v0  ;;  %v291_v17 = vld [vmem:[%s435_s4] ss:$0 sm:$0xff] }
   0x7   :  { %318 = vmatpush3.msra.mxu1 %v113_v5  ;;  %327 = vmatpush3.msra.mxu0 %v200_v8  ;;  %v293_v22 = vld [vmem:[%s436_s6] ss:$0 sm:$0xff] }
   0x8   :  { %319 = vmatprep.subr.mxu1 %v341_v0  ;;  %328 = vmatprep.subr.mxu0 %v341_v0 }
   0x9   :  { %320 = vmatpush3.msra.mxu1 %v112_v6  ;;  %329 = vmatpush3.msra.mxu0 %v199_v14 }
   0xa   :  { %321 = vmatprep.subr.mxu1 %v341_v0  ;;  %330 = vmatprep.subr.mxu0 %v341_v0 }
   0xb   :  { %322 = vmatpush3.msra.mxu1 %v111_v7  ;;  %331 = vmatpush3.msra.mxu0 %v198_v15 }
   0xc   :  { %332 = vmatprep.subr.mxu0 %v341_v0 }
   0xd   :  { %333 = vmatpush3.msra.mxu0 %v197_v16 }
  0xc5   :  { %v106_v10 = vpop.f32.mrf.mxu0 }
  0xc6   :  { %v107_v11 = vadd.f32 %v289_v9, %v106_v10 }
  0xc7   :  { %v314_v12 = vpop.f32.mrf.mxu0 }
  0xc8   :  { %v110_v13 = vmax.f32 %v107_v11, 0.0 }
  0xca   :  { %324 = vmatmul.mubr.msk.f32.vlgmr.msra.gmra.mxu1 %vm122_vm2, %v110_v13 }
 0x18a   :  { %v192_v18 = vpop.f32.mrf.mxu1 }
 0x18b   :  { %v193_v19 = vadd.f32 %v291_v17, %v192_v18 }
 0x18c   :  { %v325_v20 = vpop.f32.mrf.mxu1 }
 0x18d   :  { %v196_v21 = vmax.f32 %v193_v19, 0.0 }
 0x18f   :  { %335 = vmatmul.mubr.msk.f32.vlgmr.msra.gmra.mxu0 %vm122_vm2, %v196_v21 }
 0x24f   :  { %v277_v23 = vpop.f32.mrf.mxu0 }
 0x250   :  { %v278_v24 = vadd.f32 %v293_v22, %v277_v23 }
 0x251   :  { %v336_v25 = vpop.f32.mrf.mxu0 }
 0x252   :  { %339 = vtanh.f32 %v278_v24 }
 0x25f   :  { %v340_v26 = vpop.eup %339 }
 0x260   :  { %v282_v27 = vmul.f32 3.0, %v340_v26 }
 0x262   :  { %284 = vst.msk [vmem:[%s437_s7] sm:$0xff] %vm283_vm3, %v282_v27 }

</bundles_post_ra>
